<compile_context>
chip_gen: v7x
topology: tpu7x:2x2x1
jax: 0.10.0
libtpu: 0.0.40
codegen_flags: <defaults>
</compile_context>

<pallas_src>
import functools

import jax
import jax.numpy as jnp
from jax.experimental import pallas as pl
from jax.experimental.pallas import tpu as pltpu

HIDDEN = 32      # hidden_size
OUTPUT = 64      # output_size (vocab)
OUT_PAD = 128    # logits padded to a full lane width; sliced back outside


def _lstm_decode_kernel(tok_ref,      # SMEM (N,)       int32 token ids
                        emb_ref,      # VMEM (OUTPUT,H) embedding table (resident)
                        w_cat_ref,    # VMEM (2H, 4H)   [W_ih^T ; W_hh^T]
                        b_ref,        # VMEM (1, 4H)    b_ih + b_hh
                        wout_ref,     # VMEM (H, OUT_PAD)  W_out^T, zero-padded
                        bout_ref,     # VMEM (1, OUT_PAD)  b_out,   zero-padded
                        h0_ref,       # VMEM (1, H)
                        c0_ref,       # VMEM (1, H)
                        logits_ref,   # VMEM (N, 1, OUT_PAD) out
                        h_out_ref,    # VMEM (1, H)          out
                        c_out_ref,    # VMEM (1, H)          out
                        *, num_steps):
    H = HIDDEN

    # Weights are loaded into vregs once and reused by every step.
    w_cat = w_cat_ref[...]
    b = b_ref[...]
    w_out = wout_ref[...]
    b_out = bout_ref[...]

    def step(t, carry):
        h, c = carry
        tok = tok_ref[t]                                    # SMEM scalar read
        x = emb_ref[pl.ds(tok, 1), :]                       # (1, H) row gather
        xh = jnp.concatenate([x, h], axis=1)                # (1, 2H)

        # Single fused gate matmul: (1, 2H) @ (2H, 4H) -> (1, 4H) == one vreg.
        gates = jnp.dot(xh, w_cat, preferred_element_type=jnp.float32) + b

        # Whole-vreg activations (2 EUP passes), then 32-lane gate slices.
        sig = jax.nn.sigmoid(gates)
        tnh = jnp.tanh(gates)
        i_g = sig[:, 0 * H:1 * H]
        f_g = sig[:, 1 * H:2 * H]
        g_g = tnh[:, 2 * H:3 * H]
        o_g = sig[:, 3 * H:4 * H]

        c_new = f_g * c + i_g * g_g
        h_new = o_g * jnp.tanh(c_new)

        # Output projection, lane-dense (1, 128) store.
        logits = jnp.dot(h_new, w_out, preferred_element_type=jnp.float32) + b_out
        logits_ref[t] = logits
        return (h_new, c_new)

    unroll = num_steps <= 16   # short fixed loops: give LLO full visibility
    h_f, c_f = jax.lax.fori_loop(0, num_steps, step,
                                 (h0_ref[...], c0_ref[...]), unroll=unroll)
    h_out_ref[...] = h_f
    c_out_ref[...] = c_f


def prepare_params(params):
    """One-time weight preparation. Call once, outside the decode loop."""
    H = HIDDEN
    w_cat = jnp.concatenate([params["w_ih"].T, params["w_hh"].T], axis=0)  # (2H,4H)
    b = (params["b_ih"] + params["b_hh"]).reshape(1, 4 * H)
    w_out_pad = jnp.zeros((H, OUT_PAD), jnp.float32).at[:, :OUTPUT].set(
        params["w_out"].T)
    b_out_pad = jnp.zeros((1, OUT_PAD), jnp.float32).at[:, :OUTPUT].set(
        params["b_out"])
    return {
        "embedding": params["embedding"].astype(jnp.float32),
        "w_cat": w_cat.astype(jnp.float32),
        "b": b.astype(jnp.float32),
        "w_out_pad": w_out_pad,
        "b_out_pad": b_out_pad,
    }


@functools.partial(jax.jit, static_argnames=("num_steps",))
def _decode_call(prepped, tokens, h0, c0, *, num_steps):
    tokens = jnp.clip(tokens.astype(jnp.int32), 0, OUTPUT - 1)   # OOB-safe gather
    h0 = h0.reshape(1, HIDDEN).astype(jnp.float32)
    c0 = c0.reshape(1, HIDDEN).astype(jnp.float32)

    vmem = pl.BlockSpec(memory_space=pltpu.MemorySpace.VMEM)
    smem = pl.BlockSpec(memory_space=pltpu.MemorySpace.SMEM)

    logits_pad, h1, c1 = pl.pallas_call(
        functools.partial(_lstm_decode_kernel, num_steps=num_steps),
        out_shape=(
            jax.ShapeDtypeStruct((num_steps, 1, OUT_PAD), jnp.float32),
            jax.ShapeDtypeStruct((1, HIDDEN), jnp.float32),
            jax.ShapeDtypeStruct((1, HIDDEN), jnp.float32),
        ),
        in_specs=[smem, vmem, vmem, vmem, vmem, vmem, vmem, vmem],
        out_specs=(vmem, vmem, vmem),
    )(tokens, prepped["embedding"], prepped["w_cat"], prepped["b"],
      prepped["w_out_pad"], prepped["b_out_pad"], h0, c0)

    return logits_pad[:, 0, :OUTPUT], h1, c1


def decoder_rnn_decode(prepped, tokens, hidden):
    """Fused N-step decode (teacher-forced): equivalent to calling the module's
    forward once per token, but a single pallas_call with resident weights.

    tokens : int array, flattened to (N,)
    hidden : (h0, c0), each (1, 1, HIDDEN)
    returns (logits (N, OUTPUT), (hN (1,1,HIDDEN), cN (1,1,HIDDEN)))
    """
    h0, c0 = hidden
    tokens = jnp.asarray(tokens, jnp.int32).reshape(-1)
    n = int(tokens.shape[0])
    logits, h1, c1 = _decode_call(prepped, tokens, h0, c0, num_steps=n)
    return logits, (h1.reshape(1, 1, HIDDEN), c1.reshape(1, 1, HIDDEN))


def decoder_rnn_forward(prepped, token, hidden):
    """Exact semantics of DecoderRNN.forward (single token step)."""
    logits, hidden = decoder_rnn_decode(prepped, token, hidden)
    return logits, hidden   # logits: (1, OUTPUT)


# TODO(synk): the module's forward is hard-wired to batch=1 (view(1, 1, -1));
# batching decode streams across sublanes / the 2nd TensorCore (v7x) would
# need an interface change and is intentionally not done here.


def decoder_rnn_reference(params, token, hidden):
    """Pure-JAX reference reproducing PyTorch semantics (single step)."""
    h0, c0 = hidden
    H = HIDDEN
    tok = jnp.asarray(token, jnp.int32).reshape(())
    x = params["embedding"][tok].reshape(1, H)
    h = h0.reshape(1, H)
    c = c0.reshape(1, H)
    gates = (x @ params["w_ih"].T + params["b_ih"]
             + h @ params["w_hh"].T + params["b_hh"])
    i_g = jax.nn.sigmoid(gates[:, 0 * H:1 * H])
    f_g = jax.nn.sigmoid(gates[:, 1 * H:2 * H])
    g_g = jnp.tanh(gates[:, 2 * H:3 * H])
    o_g = jax.nn.sigmoid(gates[:, 3 * H:4 * H])
    c1 = f_g * c + i_g * g_g
    h1 = o_g * jnp.tanh(c1)
    logits = h1 @ params["w_out"].T + params["b_out"]
    return logits, (h1.reshape(1, 1, H), c1.reshape(1, 1, H))


if __name__ == "__main__":
    key = jax.random.PRNGKey(0)
    ks = jax.random.split(key, 10)
    scale = 1.0 / jnp.sqrt(jnp.float32(HIDDEN))

    params = {
        "embedding": jax.random.normal(ks[0], (OUTPUT, HIDDEN), jnp.float32),
        "w_ih": jax.random.normal(ks[1], (4 * HIDDEN, HIDDEN), jnp.float32) * scale,
        "w_hh": jax.random.normal(ks[2], (4 * HIDDEN, HIDDEN), jnp.float32) * scale,
        "b_ih": jax.random.normal(ks[3], (4 * HIDDEN,), jnp.float32) * scale,
        "b_hh": jax.random.normal(ks[4], (4 * HIDDEN,), jnp.float32) * scale,
        "w_out": jax.random.normal(ks[5], (OUTPUT, HIDDEN), jnp.float32) * scale,
        "b_out": jax.random.normal(ks[6], (OUTPUT,), jnp.float32) * scale,
    }
    prepped = prepare_params(params)   # one-time, outside the decode loop

    # --- single-step forward (matches DecoderRNN.forward exactly) -----------
    token = jnp.array([[5]], dtype=jnp.int32)          # PyTorch-style (1, 1)
    h0 = jax.random.normal(ks[7], (1, 1, HIDDEN), jnp.float32)
    c0 = jax.random.normal(ks[8], (1, 1, HIDDEN), jnp.float32)

    logits, (h1, c1) = decoder_rnn_forward(prepped, token, (h0, c0))
    jax.block_until_ready((logits, h1, c1))

    ref_logits, (ref_h1, ref_c1) = decoder_rnn_reference(params, token, (h0, c0))
    assert logits.shape == (1, OUTPUT)
    assert h1.shape == (1, 1, HIDDEN) and c1.shape == (1, 1, HIDDEN)
    assert jnp.allclose(logits, ref_logits, atol=1e-5, rtol=1e-5)
    assert jnp.allclose(h1, ref_h1, atol=1e-5, rtol=1e-5)
    assert jnp.allclose(c1, ref_c1, atol=1e-5, rtol=1e-5)

    # --- fused multi-step decode (one pallas_call for the whole loop) -------
    N_STEPS = 8
    tokens = jax.random.randint(ks[9], (N_STEPS,), 0, OUTPUT, dtype=jnp.int32)
    fused_logits, (hN, cN) = decoder_rnn_decode(prepped, tokens, (h0, c0))
    jax.block_until_ready((fused_logits, hN, cN))

    # Reference: apply the single-step reference N times.
    ref_h, ref_c = h0, c0
    ref_rows = []
    for t in range(N_STEPS):
        row, (ref_h, ref_c) = decoder_rnn_reference(params, tokens[t], (ref_h, ref_c))
        ref_rows.append(row)
    ref_seq = jnp.concatenate(ref_rows, axis=0)

    assert fused_logits.shape == (N_STEPS, OUTPUT)
    assert jnp.allclose(fused_logits, ref_seq, atol=1e-4, rtol=1e-4)
    assert jnp.allclose(hN, ref_h, atol=1e-4, rtol=1e-4)
    assert jnp.allclose(cN, ref_c, atol=1e-4, rtol=1e-4)

    print("KERNEL_OK")
</pallas_src>

<mosaic_0001>
module attributes {stable_mosaic.version = 11 : i64} {
  func.func @_lstm_decode_kernel(%arg0: memref<1xi32, #tpu.memory_space<smem>>, %arg1: memref<64x32xf32, #tpu.memory_space<vmem>>, %arg2: memref<64x128xf32, #tpu.memory_space<vmem>>, %arg3: memref<1x128xf32, #tpu.memory_space<vmem>>, %arg4: memref<32x128xf32, #tpu.memory_space<vmem>>, %arg5: memref<1x128xf32, #tpu.memory_space<vmem>>, %arg6: memref<1x32xf32, #tpu.memory_space<vmem>>, %arg7: memref<1x32xf32, #tpu.memory_space<vmem>>, %arg8: memref<1x1x128xf32, #tpu.memory_space<vmem>>, %arg9: memref<1x32xf32, #tpu.memory_space<vmem>>, %arg10: memref<1x32xf32, #tpu.memory_space<vmem>>) attributes {dimension_semantics = [], scalar_prefetch = 0 : i64, scratch_operands = 0 : i64, tpu.core_type = #tpu.core_type<tc>} {
    %c0 = arith.constant 0 : index
    %c0_0 = arith.constant 0 : index
    %0 = vector.load %arg2[%c0, %c0_0] : memref<64x128xf32, #tpu.memory_space<vmem>>, vector<64x128xf32>
    %c0_1 = arith.constant 0 : index
    %c0_2 = arith.constant 0 : index
    %1 = vector.load %arg3[%c0_1, %c0_2] : memref<1x128xf32, #tpu.memory_space<vmem>>, vector<1x128xf32>
    %c0_3 = arith.constant 0 : index
    %c0_4 = arith.constant 0 : index
    %2 = vector.load %arg4[%c0_3, %c0_4] : memref<32x128xf32, #tpu.memory_space<vmem>>, vector<32x128xf32>
    %c0_5 = arith.constant 0 : index
    %c0_6 = arith.constant 0 : index
    %3 = vector.load %arg5[%c0_5, %c0_6] : memref<1x128xf32, #tpu.memory_space<vmem>>, vector<1x128xf32>
    %c0_7 = arith.constant 0 : index
    %c0_8 = arith.constant 0 : index
    %4 = vector.load %arg6[%c0_7, %c0_8] : memref<1x32xf32, #tpu.memory_space<vmem>>, vector<1x32xf32>
    %c0_9 = arith.constant 0 : index
    %c0_10 = arith.constant 0 : index
    %5 = vector.load %arg7[%c0_9, %c0_10] : memref<1x32xf32, #tpu.memory_space<vmem>>, vector<1x32xf32>
    %c0_i32 = arith.constant 0 : i32
    %6 = arith.index_cast %c0_i32 : i32 to index
    %7 = memref.load %arg0[%6] : memref<1xi32, #tpu.memory_space<smem>>
    %8 = arith.index_cast %7 : i32 to index
    %c0_11 = arith.constant 0 : index
    %9 = vector.load %arg1[%8, %c0_11] : memref<64x32xf32, #tpu.memory_space<vmem>>, vector<1x32xf32>
    %10 = tpu.concatenate %9, %4 in 1 : vector<1x32xf32>, vector<1x32xf32> -> vector<1x64xf32>
    %cst = arith.constant dense<0.000000e+00> : vector<1x128xf32>
    %11 = tpu.matmul %10, %0, %cst {dimension_numbers = #tpu.dot_dimension_numbers<[1], [0], [0], [1], [0, 0, 1, 1], [], []>} : vector<1x64xf32>, vector<64x128xf32>, vector<1x128xf32> -> vector<1x128xf32>
    %12 = arith.addf %11, %1 : vector<1x128xf32>
    %13 = arith.negf %12 : vector<1x128xf32>
    %14 = math.exp %13 : vector<1x128xf32>
    %cst_12 = arith.constant 1.000000e+00 : f32
    %15 = vector.broadcast %cst_12 : f32 to vector<1x128xf32>
    %16 = arith.addf %15, %14 : vector<1x128xf32>
    %17 = arith.divf %15, %16 : vector<1x128xf32>
    %18 = math.tanh %12 : vector<1x128xf32>
    %19 = vector.extract_strided_slice %17 {offsets = [0, 0], sizes = [1, 32], strides = [1, 1]} : vector<1x128xf32> to vector<1x32xf32>
    %20 = vector.extract_strided_slice %17 {offsets = [0, 32], sizes = [1, 32], strides = [1, 1]} : vector<1x128xf32> to vector<1x32xf32>
    %21 = vector.extract_strided_slice %18 {offsets = [0, 64], sizes = [1, 32], strides = [1, 1]} : vector<1x128xf32> to vector<1x32xf32>
    %22 = vector.extract_strided_slice %17 {offsets = [0, 96], sizes = [1, 32], strides = [1, 1]} : vector<1x128xf32> to vector<1x32xf32>
    %23 = arith.mulf %20, %5 : vector<1x32xf32>
    %24 = arith.mulf %19, %21 : vector<1x32xf32>
    %25 = arith.addf %23, %24 : vector<1x32xf32>
    %26 = math.tanh %25 : vector<1x32xf32>
    %27 = arith.mulf %22, %26 : vector<1x32xf32>
    %cst_13 = arith.constant dense<0.000000e+00> : vector<1x128xf32>
    %28 = tpu.matmul %27, %2, %cst_13 {dimension_numbers = #tpu.dot_dimension_numbers<[1], [0], [0], [1], [0, 0, 1, 1], [], []>} : vector<1x32xf32>, vector<32x128xf32>, vector<1x128xf32> -> vector<1x128xf32>
    %29 = arith.addf %28, %3 : vector<1x128xf32>
    %30 = arith.index_cast %c0_i32 : i32 to index
    %c0_14 = arith.constant 0 : index
    %c0_15 = arith.constant 0 : index
    %31 = vector.load %arg8[%30, %c0_14, %c0_15] : memref<1x1x128xf32, #tpu.memory_space<vmem>>, vector<1x1x128xf32>
    %32 = vector.shape_cast %31 : vector<1x1x128xf32> to vector<1x128xf32>
    %33 = vector.shape_cast %29 : vector<1x128xf32> to vector<1x1x128xf32>
    tpu.vector_store %arg8[%30, %c0_14, %c0_15], %33 {strides = array<i32>} : memref<1x1x128xf32, #tpu.memory_space<vmem>>, vector<1x1x128xf32>,
    %c1_i32 = arith.constant 1 : i32
    %c0_16 = arith.constant 0 : index
    %c0_17 = arith.constant 0 : index
    %34 = vector.load %arg9[%c0_16, %c0_17] : memref<1x32xf32, #tpu.memory_space<vmem>>, vector<1x32xf32>
    tpu.vector_store %arg9[%c0_16, %c0_17], %27 {strides = array<i32>} : memref<1x32xf32, #tpu.memory_space<vmem>>, vector<1x32xf32>,
    %c0_18 = arith.constant 0 : index
    %c0_19 = arith.constant 0 : index
    %35 = vector.load %arg10[%c0_18, %c0_19] : memref<1x32xf32, #tpu.memory_space<vmem>>, vector<1x32xf32>
    tpu.vector_store %arg10[%c0_18, %c0_19], %25 {strides = array<i32>} : memref<1x32xf32, #tpu.memory_space<vmem>>, vector<1x32xf32>,
    return
  }
}

</mosaic_0001>

<bundles_post_ra>
// kernel: _decode_call.1
= control target key start
LH: loop header
LB: loop body
LE: loop exit
PB: predicated region body
PF: predicated region fallthrough
CT: control target
= control target key end

     0   :  { %17 = vsyncpa [#allocation4], 0  ;;  %s418_s19 = smov 32   ;;  %v419_v3 = vmov 0.0|0.0   ;;  %vm420_vm0 = vmmov 0   ;;  %v421_v7 = vmov 0.0   ;;  %s574_s0 = inlined_call_operand.<no memory space> [shape: s32[1], index: 0, kind: input, shape index: {}]   ;;  %s575_s1 = inlined_call_operand.vmem [shape: f32[64,32], index: 1, kind: input, shape index: {}]   ;;  %s576_s2 = inlined_call_operand.vmem [shape: f32[64,128], index: 2, kind: input, shape index: {}]   ;;  %s577_s3 = inlined_call_operand.vmem [shape: f32[1,128], index: 3, kind: input, shape index: {}]   ;;  %s578_s4 = inlined_call_operand.vmem [shape: f32[32,128], index: 4, kind: input, shape index: {}]   ;;  %s579_s5 = inlined_call_operand.vmem [shape: f32[1,128], index: 5, kind: input, shape index: {}]   ;;  %s580_s6 = inlined_call_operand.vmem [shape: f32[1,32], index: 6, kind: input, shape index: {}]   ;;  %s581_s7 = inlined_call_operand.vmem [shape: f32[1,32], index: 7, kind: input, shape index: {}]   ;;  %s582_s8 = inlined_call_operand.vmem [shape: f32[1,1,128], index: 8, kind: output, shape index: {0}]   ;;  %s583_s9 = inlined_call_operand.hbm [shape: f32[1,32], index: 9, kind: output, shape index: {1}]   ;;  %s584_s10 = inlined_call_operand.hbm [shape: f32[1,32], index: 10, kind: output, shape index: {2}]  }
   0x1   :  { %v287_v0 = vld [vmem:[%s580_s6] ss:$0 sm:$0xff]  ;;  %v36_v2 = vld [vmem:[%s576_s2 + $0x8] sm:$0xff]  ;;  %336 = vmatprep.subr.bf16.mxu0 %v419_v3  ;;  %v37_v5 = vld [vmem:[%s576_s2 + $0x10] sm:$0xff]  ;;  %322 = vmatprep.mubr.msk.f32.mxu0 %vm420_vm0, %v421_v7 }
   0x2   :  { %v35_v1 = vld [vmem:[%s576_s2] sm:$0xff]  ;;  %59 = vrot.lane.b32.xlu0 %v287_v0, %s418_s19  ;;  %v38_v6 = vld [vmem:[%s576_s2 + $0x18] sm:$0xff]  ;;  %348 = vmatprep.subr.bf16.mxu1 %v419_v3  ;;  %v40_v11 = vld [vmem:[%s576_s2 + $0x28] sm:$0xff] }
   0x3   :  { %v337_v4 = vpack.c.bf16 %v36_v2, %v35_v1  ;;  %v340_v8 = vpack.c.bf16 %v38_v6, %v37_v5  ;;  %v290_v9 = vld [vmem:[%s581_s7] ss:$0 sm:$0xff]  ;;  %333 = vmatprep.mubr.msk.f32.mxu1 %vm420_vm0, %v421_v7 }
   0x4   :  { %v39_v10 = vld [vmem:[%s576_s2 + $0x20] sm:$0xff]  ;;  %150 = vrot.lane.b32.xlu1 %v290_v9, %s418_s19 }
   0x5   :  { %338 = vmatpush3.bf16.msra.mxu0 %v337_v4 }
   0x6   :  { %339 = vmatprep.subr.bf16.mxu0 %v419_v3 }
   0x7   :  { %18 = vsyncpa [#allocation6], 0  ;;  %v343_v12 = vpack.c.bf16 %v40_v11, %v39_v10  ;;  %v41_v13 = vld [vmem:[%s576_s2 + $0x30] sm:$0xff]  ;;  %v42_v14 = vld [vmem:[%s576_s2 + $0x38] sm:$0xff]  ;;  %s52_s16 = scalar_lea.vmem %s575_s1, %s574_s0  ;;  %vm62_vm1 = vcmask 261120   ;;  %vm64_vm2 = vcmask 523264  }
   0x8   :  { %v346_v15 = vpack.c.bf16 %v42_v14, %v41_v13  ;;  %v53_v16 = vld [vmem:[%s52_s16] sm:$0x1]  ;;  %s422_s18 = smov 64   ;;  %v45_v35 = vld [vmem:[%s578_s4 + $0x8] sm:$0xff]  ;;  %v46_v36 = vld [vmem:[%s578_s4 + $0x10] sm:$0xff]  ;;  %s423_s24 = smov 96  }
   0x9   :  { %341 = vmatpush3.bf16.msra.mxu0 %v340_v8  ;;  %v43_v19 = vld [vmem:[%s577_s3] sm:$0x1]  ;;  %v47_v38 = vld [vmem:[%s578_s4 + $0x18] sm:$0xff]  ;;  %vm247_vm3 = vcmask 253952   ;;  %s425_s26 = smov [#allocation5]  }
   0xa   :  { %342 = vmatprep.subr.bf16.mxu0 %v419_v3  ;;  %v44_v34 = vld [vmem:[%s578_s4] sm:$0xff]  ;;  %v352_v39 = vpack.c.bf16 %v47_v38, %v46_v36  ;;  %s424_s4 = smov [#allocation3]   ;;  %s272_s27 = sshll.u32 %s425_s26, 4  ;;  %s273_s27 = int_to_ptr.vmem [resolvable:$true] %s272_s27 }
   0xb   :  { %v349_v37 = vpack.c.bf16 %v45_v35, %v44_v34  ;;  %s262_s25 = sshll.u32 %s424_s4, 4  ;;  %s263_s25 = int_to_ptr.vmem [resolvable:$true] %s262_s25 }
   0xc   :  { %s370_s28 = scalar_lea.vmem %s263_s25, 16  ;;  %s374_s29 = scalar_lea.vmem %s263_s25, 32 }
   0xd   :  { %344 = vmatpush3.bf16.msra.mxu0 %v343_v12  ;;  %350 = vmatpush3.bf16.msra.mxu1 %v349_v37  ;;  %p371_p0 = scmp.ne.s32.totalorder %s263_s25, %s370_s28  ;;  %p375_p1 = scmp.lt.s32.totalorder %s263_s25, %s263_s25 }
   0xe   :  { %345 = vmatprep.subr.bf16.mxu0 %v419_v3  ;;  %351 = vmatprep.subr.bf16.mxu1 %v419_v3  ;;  %p376_p2 = scmp.lt.s32.totalorder %s374_s29, %s370_s28 }
  0x10   :  { %p377_p3 = por %p376_p2, %p375_p1 }
  0x11   :  { %347 = vmatpush3.bf16.msra.mxu0 %v346_v15  ;;  %353 = vmatpush3.bf16.msra.mxu1 %v352_v39 }
  0x12   :  { %p378_p4 = pnand %p377_p3, %p371_p0 }
  0x74   :  { %v60_v17 = vpop.permute.xlu0 %59 }
  0x75   :  { %v63_v18 = vsel %vm62_vm1, %v53_v16, %v60_v17 }
  0x76   :  { %323 = vmatmul.mubr.msk.f32.vlgmr.msra.gmra.mrb[0].mxu0 %vm64_vm2, %v63_v18  ;;  %v151_v30 = vpop.permute.xlu1 %150 }
 0x149   :  { %v134_v20 = vpop.f32.mrb[0].mxu0 }
 0x14a   :  { %v135_v21 = vadd.f32 %v134_v20, %v43_v19  ;;  %v324_v22 = vpop.f32.mrb[1].mxu0 }
 0x14c   :  { %362 = vtanh.f32 %v135_v21  ;;  %v289_v24 = vmul.f32 -1.442695, %v135_v21 }
 0x14e   :  { %364 = vpow2.f32 %v289_v24 }
 0x156   :  { %v363_v23 = vpop.eup %362 }
 0x157   :  { %155 = vrot.lane.b32.xlu0 %v363_v23, %s422_s18 }
 0x158   :  { %v365_v25 = vpop.eup %364 }
 0x159   :  { %v141_v26 = vadd.f32 1.0, %v365_v25 }
 0x15b   :  { %366 = vrcp.f32 %v141_v26 }
 0x165   :  { %v367_v27 = vpop.eup %366 }
 0x166   :  { %v153_v31 = vmul.f32 %v367_v27, %v151_v30 }
 0x1c9   :  { %v156_v28 = vpop.permute.xlu0 %155 }
 0x1ca   :  { %v158_v29 = vmul.f32 %v367_v27, %v156_v28 }
 0x1cc   :  { %160 = vrot.lane.b32.xlu1 %v158_v29, %s418_s19 }
 0x23e   :  { %v161_v32 = vpop.permute.xlu1 %160 }
 0x23f   :  { %v163_v33 = vadd.f32 %v161_v32, %v153_v31 }
 0x241   :  { %368 = vtanh.f32 %v163_v33 }
 0x24b   :  { %v369_v40 = vpop.eup %368 }
 0x24c   :  { %166 = vrot.lane.b32.xlu0 %v369_v40, %s422_s18 }
 0x250   :  { %250 = vrot.lane.b32.xlu0 %v163_v33, %s423_s24 }
 0x2be   :  { %v167_v41 = vpop.permute.xlu0 %166 }
 0x2bf   :  { %v169_v42 = vmul.f32 %v367_v27, %v167_v41 }
 0x2c1   :  { %171 = vrot.lane.b32.xlu1 %v169_v42, %s418_s19 }
 0x2c2   :  { %v251_v43 = vpop.permute.xlu0 %250 }
 0x2c3   :  { %253 = vst.msk [vmem:[#allocation5] sm:$0x1] %vm247_vm3, %v251_v43 }
 0x333   :  { %v172_v44 = vpop.permute.xlu1 %171 }
 0x334   :  { %248 = vst.msk [vmem:[#allocation3] sm:$0x1] %vm247_vm3, %v172_v44  ;;  %334 = vmatmul.mubr.msk.f32.vlgmr.msra.gmra.mrb[0].mxu1 %vm62_vm1, %v172_v44 }
 0x335   :  { %381 = shalt.err (!%p378_p4)
}
 0x336   :  { %s382_s30 = scalar_lea.hbm %s583_s9, 16 }
 0x337   :  { %p383_p5 = scmp.ne.s32.totalorder %s583_s9, %s382_s30  ;;  %p386_p6 = scmp.lt.u32.totalorder %s382_s30, %s583_s9 }
 0x339   :  { %p388_p7 = pnand %p386_p6, %p383_p5 }
 0x33b   :  { %391 = shalt.err (!%p388_p7)
}
 0x33c   :  { %265 = dma.vmem_to_hbm [thread:$0]  %s263_s25, 16, %s583_s9, [#allocation4]  }
 0x33d   :  { %s392_s2 = scalar_lea.vmem %s273_s27, 16  ;;  %s396_s17 = scalar_lea.vmem %s273_s27, 32 }
 0x33e   :  { %p393_p8 = scmp.ne.s32.totalorder %s273_s27, %s392_s2  ;;  %p397_p9 = scmp.lt.s32.totalorder %s273_s27, %s273_s27 }
 0x33f   :  { %p398_p10 = scmp.lt.s32.totalorder %s396_s17, %s392_s2 }
 0x341   :  { %p399_p11 = por %p398_p10, %p397_p9 }
 0x343   :  { %p400_p12 = pnand %p399_p11, %p393_p8 }
 0x345   :  { %403 = shalt.err (!%p400_p12)
}
 0x346   :  { %s404_s1 = scalar_lea.hbm %s584_s10, 16 }
 0x347   :  { %p405_p13 = scmp.ne.s32.totalorder %s584_s10, %s404_s1  ;;  %p408_p0 = scmp.lt.u32.totalorder %s404_s1, %s584_s10 }
 0x349   :  { %p410_p1 = pnand %p408_p0, %p405_p13 }
 0x34b   :  { %413 = shalt.err (!%p410_p1)
}
 0x34c   :  { %275 = dma.vmem_to_hbm [thread:$0]  %s273_s27, 16, %s584_s10, [#allocation6]   ;;  %v48_v45 = vld [vmem:[%s579_s5] sm:$0x1] }
 0x407   :  { %v241_v46 = vpop.f32.mrb[0].mxu1 }
 0x408   :  { %v242_v47 = vadd.f32 %v241_v46, %v48_v45  ;;  %v335_v48 = vpop.f32.mrb[1].mxu1 }
 0x40a   :  { %245 = vst [vmem:[%s582_s8] sm:$0x1] %v242_v47 }
 0x40b   :  { %414 = dma.done.wait [#allocation4], 16  }
 0x40c   :  { %415 = vsyncadd [#allocation4], 4294967280 }
 0x40d   :  { %416 = dma.done.wait [#allocation6], 16  }
 0x40e   :  { %417 = vsyncadd [#allocation6], 4294967280 }
 0x40f   :  { %284 = vsyncpa [#allocation4], 1 }
 0x410   :  { %285 = vsyncpa [#allocation6], 1 }

</bundles_post_ra>
